<compile_context>
chip_gen: v7x
topology: tpu7x:2x2x1
jax: 0.10.0
libtpu: 0.0.40
codegen_flags: <defaults>
</compile_context>

<pallas_src>
import functools

import jax
import jax.numpy as jnp
from jax.experimental import pallas as pl
from jax.experimental.pallas import tpu as pltpu


def _mlp_kernel(x_ref, w1_ref, b1_ref, w2_ref, b2_ref, w3_ref, b3_ref, o_ref,
                *, act_dtype):
    """One batch tile of the MLP, entirely in VMEM, feature-major activations.

    x_ref : (tm, 2)    f32        (PyTorch-native layout, no host transpose)
    w1_ref: (128, 2)   f32        b1_ref: (128, 1) act_dtype
    w2_ref: (128, 128) bf16       b2_ref: (128, 1) act_dtype
    w3_ref: (1, 128)   bf16       b3_ref: (1, 1)   f32
    o_ref : (1, tm)    f32        (lane-dense -> unmasked stores)
    """
    # ---- Layer 1 (2 -> 128) on the MXU via an NT matmul ----
    # h[f, b] = sum_k w1[f, k] * x[b, k]; the batch lands in the lane dim, so
    # the hidden state is feature-major without any host-side transpose.  The
    # degenerate K=2 contraction is effectively free: the MXU slot is idle and
    # the saturating unit at large tm is the VPU.
    h = jax.lax.dot_general(
        w1_ref[...], x_ref[...], (((1,), (1,)), ((), ())),
        preferred_element_type=jnp.float32)                       # (128, tm) f32
    h = jnp.maximum(h.astype(act_dtype) + b1_ref[...], 0.0)

    # ---- Layer 2 (128 -> 128): bf16 MXU matmul, f32 accumulation ----
    h = jnp.dot(w2_ref[...], h.astype(jnp.bfloat16),
                preferred_element_type=jnp.float32)               # (128, tm) f32
    h = jnp.maximum(h.astype(act_dtype) + b2_ref[...], 0.0)

    # ---- Layer 3 (128 -> 1): lane-dense (1, tm) result, unmasked store ----
    z = jnp.dot(w3_ref[...], h.astype(jnp.bfloat16),
                preferred_element_type=jnp.float32)               # (1, tm) f32
    o_ref[...] = jax.nn.sigmoid(z + b3_ref[...]).astype(o_ref.dtype)


def _act_dtype_for_device():
    """bf16 elementwise on v6e/v7x (native bf16 VPU); f32 on v5e and older."""
    try:
        kind = jax.devices()[0].device_kind.lower()
    except Exception:
        return jnp.float32
    if "v6" in kind or "v7" in kind:
        return jnp.bfloat16
    return jnp.float32


def _pick_batch_tile(B, tm_target):
    """Batch tile obeying TPU layout rules, with >=2 grid steps when B >= 512.

    Constraints satisfied:
      * x block (tm, 2):  tm % 8 == 0   or tm == B (full array)
      * out block (1, tm): tm % 128 == 0 or tm == B (full array)
      * tm <= B, so ragged handling only ever applies to the last block.
    """
    tm_target = max(128, -(-int(tm_target) // 128) * 128)
    if B >= 2 * tm_target:
        return tm_target
    if B >= 512:
        # Split into (exactly) two parallel blocks so both v7x TCs get work.
        half = -(-B // 2)
        return min(tm_target, -(-half // 128) * 128)
    return B  # single block covering the full array


@functools.partial(jax.jit, static_argnames=("tm_target", "act_dtype"))
def classifier_forward(x, w1, b1, w2, b2, w3, b3, *, tm_target=4096,
                       act_dtype=None):
    """x: (B, 2) f32; weights in PyTorch nn.Linear (out, in) layout -> (B, 1)."""
    B, f_in = x.shape
    assert f_in == 2
    H = w1.shape[0]
    if act_dtype is None:
        act_dtype = _act_dtype_for_device()

    tm = _pick_batch_tile(B, tm_target)
    grid = (pl.cdiv(B, tm),)

    # bf16 weights for the MXU layers; biases as column vectors.
    w2b = w2.astype(jnp.bfloat16)
    w3b = w3.astype(jnp.bfloat16)
    b1c = b1.reshape(H, 1).astype(act_dtype)
    b2c = b2.reshape(H, 1).astype(act_dtype)
    b3c = b3.reshape(1, 1).astype(jnp.float32)

    flops = 2 * B * (2 * H + H * H + H)
    bytes_accessed = (x.size + B + w1.size + b1.size + b2.size + b3.size) * 4 \
        + (w2b.size + w3b.size) * 2

    kernel = functools.partial(_mlp_kernel, act_dtype=act_dtype)

    out_t = pl.pallas_call(
        kernel,
        out_shape=jax.ShapeDtypeStruct((1, B), jnp.float32),
        grid_spec=pltpu.PrefetchScalarGridSpec(
            num_scalar_prefetch=0,
            grid=grid,
            in_specs=[
                pl.BlockSpec((tm, 2), lambda i: (i, 0)),   # x tile (ragged edge OK)
                pl.BlockSpec((H, 2), lambda i: (0, 0)),    # w1 (VMEM-resident)
                pl.BlockSpec((H, 1), lambda i: (0, 0)),    # b1
                pl.BlockSpec((H, H), lambda i: (0, 0)),    # w2 (bf16, resident)
                pl.BlockSpec((H, 1), lambda i: (0, 0)),    # b2
                pl.BlockSpec((1, H), lambda i: (0, 0)),    # w3 (bf16)
                pl.BlockSpec((1, 1), lambda i: (0, 0)),    # b3
            ],
            out_specs=pl.BlockSpec((1, tm), lambda i: (0, i)),
        ),
        compiler_params=pltpu.CompilerParams(
            dimension_semantics=("parallel",),
            vmem_limit_bytes=48 * 1024 * 1024,
        ),
        cost_estimate=pl.CostEstimate(
            flops=flops, transcendentals=2 * B, bytes_accessed=bytes_accessed),
    )(x, w1, b1c, w2b, b2c, w3b, b3c)

    # (1, B) -> (B, 1) is a pure row-major reshape (no copy / extra HBM pass).
    return out_t.reshape(B, 1)


def _init_linear(key, fan_in, fan_out):
    """PyTorch nn.Linear-style init (uniform +-1/sqrt(fan_in)), (out, in) layout."""
    kw, kb = jax.random.split(key)
    bound = 1.0 / jnp.sqrt(jnp.float32(fan_in))
    w = jax.random.uniform(kw, (fan_out, fan_in), jnp.float32, -bound, bound)
    b = jax.random.uniform(kb, (fan_out,), jnp.float32, -bound, bound)
    return w, b


def _reference_forward(x, w1, b1, w2, b2, w3, b3):
    h = jax.nn.relu(x @ w1.T + b1)
    h = jax.nn.relu(h @ w2.T + b2)
    return jax.nn.sigmoid(h @ w3.T + b3)


if __name__ == "__main__":
    key = jax.random.PRNGKey(0)
    kx, k1, k2, k3 = jax.random.split(key, 4)

    H = 128
    w1, b1 = _init_linear(k1, 2, H)
    w2, b2 = _init_linear(k2, H, H)
    w3, b3 = _init_linear(k3, H, 1)

    # 1) Small single-block case (B = 8): block == full array.
    B = 8
    x = jax.random.normal(kx, (B, 2), jnp.float32)
    out = jax.block_until_ready(classifier_forward(x, w1, b1, w2, b2, w3, b3))
    ref = _reference_forward(x, w1, b1, w2, b2, w3, b3)
    assert out.shape == (B, 1)
    # bf16 MXU matmuls (and bf16 activations on v6e/v7x) -> loosened tolerance.
    assert jnp.allclose(out, ref, atol=2e-2, rtol=2e-2), float(
        jnp.max(jnp.abs(out - ref)))

    # 2) Multi-block case with a ragged last tile: exercises the production
    #    path (two "parallel" batch tiles, masked OOB writeback, no host pad).
    B2 = 1000
    x2 = jax.random.normal(kx, (B2, 2), jnp.float32)
    out2 = jax.block_until_ready(classifier_forward(x2, w1, b1, w2, b2, w3, b3))
    ref2 = _reference_forward(x2, w1, b1, w2, b2, w3, b3)
    assert out2.shape == (B2, 1)
    assert jnp.allclose(out2, ref2, atol=2e-2, rtol=2e-2), float(
        jnp.max(jnp.abs(out2 - ref2)))

    print("KERNEL_OK")
</pallas_src>

<mosaic_0001>
module attributes {stable_mosaic.version = 11 : i64} {
  func.func @_mlp_kernel(%arg0: i32, %arg1: memref<8x2xf32, #tpu.memory_space<vmem>>, %arg2: memref<128x2xf32, #tpu.memory_space<vmem>>, %arg3: memref<128x1xf32, #tpu.memory_space<vmem>>, %arg4: memref<128x128xbf16, #tpu.memory_space<vmem>>, %arg5: memref<128x1xf32, #tpu.memory_space<vmem>>, %arg6: memref<1x128xbf16, #tpu.memory_space<vmem>>, %arg7: memref<1x1xf32, #tpu.memory_space<vmem>>, %arg8: memref<1x8xf32, #tpu.memory_space<vmem>>) attributes {dimension_semantics = [#tpu.dimension_semantics<parallel>], iteration_bounds = array<i64: 1>, scalar_prefetch = 0 : i64, scratch_operands = 0 : i64, tpu.core_type = #tpu.core_type<tc>, window_params = [{transform_indices = @transform_0, window_bounds = array<i64: 8, 2>}, {pipeline_mode = #tpu.pipeline_mode<synchronous>, transform_indices = @transform_1, window_bounds = array<i64: 128, 2>}, {pipeline_mode = #tpu.pipeline_mode<synchronous>, transform_indices = @transform_2, window_bounds = array<i64: 128, 1>}, {pipeline_mode = #tpu.pipeline_mode<synchronous>, transform_indices = @transform_3, window_bounds = array<i64: 128, 128>}, {pipeline_mode = #tpu.pipeline_mode<synchronous>, transform_indices = @transform_4, window_bounds = array<i64: 128, 1>}, {pipeline_mode = #tpu.pipeline_mode<synchronous>, transform_indices = @transform_5, window_bounds = array<i64: 1, 128>}, {pipeline_mode = #tpu.pipeline_mode<synchronous>, transform_indices = @transform_6, window_bounds = array<i64: 1, 1>}, {transform_indices = @transform_7, window_bounds = array<i64: 1, 8>}]} {
    %c0 = arith.constant 0 : index
    %c0_0 = arith.constant 0 : index
    %0 = vector.load %arg2[%c0, %c0_0] : memref<128x2xf32, #tpu.memory_space<vmem>>, vector<128x2xf32>
    %c0_1 = arith.constant 0 : index
    %c0_2 = arith.constant 0 : index
    %1 = vector.load %arg1[%c0_1, %c0_2] : memref<8x2xf32, #tpu.memory_space<vmem>>, vector<8x2xf32>
    %cst = arith.constant dense<0.000000e+00> : vector<128x8xf32>
    %2 = tpu.matmul %0, %1, %cst {dimension_numbers = #tpu.dot_dimension_numbers<[1], [1], [0], [0], [0, 0, 1, 0], [], []>} : vector<128x2xf32>, vector<8x2xf32>, vector<128x8xf32> -> vector<128x8xf32>
    %c0_3 = arith.constant 0 : index
    %c0_4 = arith.constant 0 : index
    %3 = vector.load %arg3[%c0_3, %c0_4] : memref<128x1xf32, #tpu.memory_space<vmem>>, vector<128x1xf32>
    %4 = vector.broadcast %3 : vector<128x1xf32> to vector<128x8xf32>
    %5 = arith.addf %2, %4 : vector<128x8xf32>
    %cst_5 = arith.constant 0.000000e+00 : f32
    %6 = vector.broadcast %cst_5 : f32 to vector<128x8xf32>
    %7 = arith.maximumf %5, %6 : vector<128x8xf32>
    %c0_6 = arith.constant 0 : index
    %c0_7 = arith.constant 0 : index
    %8 = vector.load %arg4[%c0_6, %c0_7] : memref<128x128xbf16, #tpu.memory_space<vmem>>, vector<128x128xbf16>
    %9 = arith.truncf %7 : vector<128x8xf32> to vector<128x8xbf16>
    %cst_8 = arith.constant dense<0.000000e+00> : vector<128x8xf32>
    %10 = tpu.matmul %8, %9, %cst_8 {dimension_numbers = #tpu.dot_dimension_numbers<[1], [0], [0], [1], [0, 0, 1, 1], [], []>} : vector<128x128xbf16>, vector<128x8xbf16>, vector<128x8xf32> -> vector<128x8xf32>
    %c0_9 = arith.constant 0 : index
    %c0_10 = arith.constant 0 : index
    %11 = vector.load %arg5[%c0_9, %c0_10] : memref<128x1xf32, #tpu.memory_space<vmem>>, vector<128x1xf32>
    %12 = vector.broadcast %11 : vector<128x1xf32> to vector<128x8xf32>
    %13 = arith.addf %10, %12 : vector<128x8xf32>
    %cst_11 = arith.constant 0.000000e+00 : f32
    %14 = vector.broadcast %cst_11 : f32 to vector<128x8xf32>
    %15 = arith.maximumf %13, %14 : vector<128x8xf32>
    %c0_12 = arith.constant 0 : index
    %c0_13 = arith.constant 0 : index
    %16 = vector.load %arg6[%c0_12, %c0_13] : memref<1x128xbf16, #tpu.memory_space<vmem>>, vector<1x128xbf16>
    %17 = arith.truncf %15 : vector<128x8xf32> to vector<128x8xbf16>
    %cst_14 = arith.constant dense<0.000000e+00> : vector<1x8xf32>
    %18 = tpu.matmul %16, %17, %cst_14 {dimension_numbers = #tpu.dot_dimension_numbers<[1], [0], [0], [1], [0, 0, 1, 1], [], []>} : vector<1x128xbf16>, vector<128x8xbf16>, vector<1x8xf32> -> vector<1x8xf32>
    %c0_15 = arith.constant 0 : index
    %c0_16 = arith.constant 0 : index
    %19 = vector.load %arg7[%c0_15, %c0_16] : memref<1x1xf32, #tpu.memory_space<vmem>>, vector<1x1xf32>
    %20 = vector.broadcast %19 : vector<1x1xf32> to vector<1x8xf32>
    %21 = arith.addf %18, %20 : vector<1x8xf32>
    %22 = arith.negf %21 : vector<1x8xf32>
    %23 = math.exp %22 : vector<1x8xf32>
    %cst_17 = arith.constant 1.000000e+00 : f32
    %24 = vector.broadcast %cst_17 : f32 to vector<1x8xf32>
    %25 = arith.addf %24, %23 : vector<1x8xf32>
    %26 = arith.divf %24, %25 : vector<1x8xf32>
    %c0_18 = arith.constant 0 : index
    %c0_19 = arith.constant 0 : index
    %27 = vector.load %arg8[%c0_18, %c0_19] : memref<1x8xf32, #tpu.memory_space<vmem>>, vector<1x8xf32>
    tpu.vector_store %arg8[%c0_18, %c0_19], %26 {strides = array<i32>} : memref<1x8xf32, #tpu.memory_space<vmem>>, vector<1x8xf32>,
    return
  }
  func.func @transform_0(%arg0: i32) -> (i32, i32) {
    %c0_i32 = arith.constant 0 : i32
    %c0_i32_0 = arith.constant 0 : i32
    return %arg0, %c0_i32 : i32, i32
  }
  func.func @transform_1(%arg0: i32) -> (i32, i32) {
    %c0_i32 = arith.constant 0 : i32
    %c0_i32_0 = arith.constant 0 : i32
    %c0_i32_1 = arith.constant 0 : i32
    return %c0_i32, %c0_i32_0 : i32, i32
  }
  func.func @transform_2(%arg0: i32) -> (i32, i32) {
    %c0_i32 = arith.constant 0 : i32
    %c0_i32_0 = arith.constant 0 : i32
    %c0_i32_1 = arith.constant 0 : i32
    return %c0_i32, %c0_i32_0 : i32, i32
  }
  func.func @transform_3(%arg0: i32) -> (i32, i32) {
    %c0_i32 = arith.constant 0 : i32
    %c0_i32_0 = arith.constant 0 : i32
    %c0_i32_1 = arith.constant 0 : i32
    return %c0_i32, %c0_i32_0 : i32, i32
  }
  func.func @transform_4(%arg0: i32) -> (i32, i32) {
    %c0_i32 = arith.constant 0 : i32
    %c0_i32_0 = arith.constant 0 : i32
    %c0_i32_1 = arith.constant 0 : i32
    return %c0_i32, %c0_i32_0 : i32, i32
  }
  func.func @transform_5(%arg0: i32) -> (i32, i32) {
    %c0_i32 = arith.constant 0 : i32
    %c0_i32_0 = arith.constant 0 : i32
    %c0_i32_1 = arith.constant 0 : i32
    return %c0_i32, %c0_i32_0 : i32, i32
  }
  func.func @transform_6(%arg0: i32) -> (i32, i32) {
    %c0_i32 = arith.constant 0 : i32
    %c0_i32_0 = arith.constant 0 : i32
    %c0_i32_1 = arith.constant 0 : i32
    return %c0_i32, %c0_i32_0 : i32, i32
  }
  func.func @transform_7(%arg0: i32) -> (i32, i32) {
    %c0_i32 = arith.constant 0 : i32
    %c0_i32_0 = arith.constant 0 : i32
    return %c0_i32, %arg0 : i32, i32
  }
}

</mosaic_0001>

<bundles_post_ra>
// kernel: classifier_forward.1
= control target key start
LH: loop header
LB: loop body
LE: loop exit
PB: predicated region body
PF: predicated region fallthrough
CT: control target
= control target key end

     0   :  { %s1166_s0 = inlined_call_operand.vmem [shape: f32[8,2], index: 0, kind: input, shape index: {}]   ;;  %s1167_s1 = inlined_call_operand.vmem [shape: f32[128,2], index: 1, kind: input, shape index: {}]   ;;  %s1168_s2 = inlined_call_operand.vmem [shape: f32[128,1], index: 2, kind: input, shape index: {}]   ;;  %s1169_s3 = inlined_call_operand.vmem [shape: bf16[128,128], index: 3, kind: input, shape index: {}]   ;;  %s1170_s4 = inlined_call_operand.vmem [shape: f32[128,1], index: 4, kind: input, shape index: {}]   ;;  %s1171_s5 = inlined_call_operand.vmem [shape: bf16[1,128], index: 5, kind: input, shape index: {}]   ;;  %s1172_s6 = inlined_call_operand.<no memory space> [shape: f32[1,1], index: 6, kind: input, shape index: {}]   ;;  %s1173_s7 = inlined_call_operand.hbm [shape: f32[1,8], index: 7, kind: output, shape index: {}]  }
   0x1   :  { %v12_v0 = vstv %s1172_s6 }
   0x2   :  { %13 = vst [vmem:[#allocation2] sm:$0x1] %v12_v0 }
   0x3   :  { %v46_v1 = vld [vmem:[%s1166_s0] sm:$0xff]  ;;  %vm143_vm0 = vcmask 15360   ;;  %v31_v3 = vld [vmem:[%s1167_s1 + $0x8] sm:$0xff]  ;;  %v906_v4 = vmov 0   ;;  %v32_v5 = vld [vmem:[%s1167_s1 + $0x10] sm:$0xff] }
   0x4   :  { %v30_v2 = vld [vmem:[%s1167_s1] sm:$0xff]  ;;  %786 = vmatprep.subr.msk.mxu0 %vm143_vm0, %v46_v1  ;;  %868 = vset.pattern.permute.xlu0 %v906_v4  ;;  %v48_v7 = vld [vmem:[%s1168_s2 + $0x8] sm:$0xff]  ;;  %v49_v8 = vld [vmem:[%s1168_s2 + $0x10] sm:$0xff] }
   0x5   :  { %788 = vmatprep.mubr.msk.f32.mxu0 %vm143_vm0, %v30_v2  ;;  %787 = vmatpush3.xpose.msk.msra.mxu0 %vm143_vm0, %v46_v1  ;;  %v47_v6 = vld [vmem:[%s1168_s2] sm:$0xff]  ;;  %v33_v9 = vld [vmem:[%s1167_s1 + $0x18] sm:$0xff]  ;;  %v35_v13 = vld [vmem:[%s1167_s1 + $0x28] sm:$0xff] }
   0x6   :  { %869 = vset.pattern.permute.xlu1 %v906_v4  ;;  %65 = vperm.xlu0 %868, %v47_v6   ;;  %v34_v10 = vld [vmem:[%s1167_s1 + $0x20] sm:$0xff]  ;;  %v50_v11 = vld [vmem:[%s1168_s2 + $0x18] sm:$0xff]  ;;  %v36_v14 = vld [vmem:[%s1167_s1 + $0x30] sm:$0xff] }
   0x7   :  { %75 = vperm.xlu1 %869, %v49_v8   ;;  %v51_v12 = vld [vmem:[%s1168_s2 + $0x20] sm:$0xff]  ;;  %v52_v15 = vld [vmem:[%s1168_s2 + $0x28] sm:$0xff]  ;;  %v53_v16 = vld [vmem:[%s1168_s2 + $0x30] sm:$0xff] }
   0x8   :  { %789 = vmatmul.mubr.msk.f32.vlgmr.msra.gmra.mrb[0].mxu0 %vm143_vm0, %v31_v3  ;;  %v37_v17 = vld [vmem:[%s1167_s1 + $0x38] sm:$0xff]  ;;  %v38_v18 = vld [vmem:[%s1167_s1 + $0x40] sm:$0xff]  ;;  %v39_v20 = vld [vmem:[%s1167_s1 + $0x48] sm:$0xff] }
   0x9   :  { %791 = vmatprep.mubr.msk.f32.mxu0 %vm143_vm0, %v32_v5  ;;  %v54_v19 = vld [vmem:[%s1168_s2 + $0x38] sm:$0xff]  ;;  %v55_v21 = vld [vmem:[%s1168_s2 + $0x40] sm:$0xff]  ;;  %v40_v22 = vld [vmem:[%s1167_s1 + $0x50] sm:$0xff] }
   0xa   :  { %70 = vperm.xlu0 %868, %v48_v7   ;;  %v56_v23 = vld [vmem:[%s1168_s2 + $0x48] sm:$0xff]  ;;  %v57_v24 = vld [vmem:[%s1168_s2 + $0x50] sm:$0xff]  ;;  %v41_v25 = vld [vmem:[%s1167_s1 + $0x58] sm:$0xff] }
   0xb   :  { %80 = vperm.xlu1 %869, %v50_v11  }
   0xc   :  { %792 = vmatmul.mubr.msk.f32.gmra.mrb[2].mxu0 %vm143_vm0, %v33_v9 }
   0xd   :  { %794 = vmatprep.mubr.msk.f32.mxu0 %vm143_vm0, %v34_v10 }
   0xe   :  { %85 = vperm.xlu0 %868, %v51_v12  }
   0xf   :  { %90 = vperm.xlu1 %869, %v52_v15  }
  0x10   :  { %795 = vmatmul.mubr.msk.f32.gmra.mrb[4].mxu0 %vm143_vm0, %v35_v13 }
  0x11   :  { %797 = vmatprep.mubr.msk.f32.mxu0 %vm143_vm0, %v36_v14 }
  0x12   :  { %95 = vperm.xlu0 %868, %v53_v16  }
  0x13   :  { %100 = vperm.xlu1 %869, %v54_v19  }
  0x14   :  { %798 = vmatmul.mubr.msk.f32.gmra.mrb[6].mxu0 %vm143_vm0, %v37_v17 }
  0x15   :  { %800 = vmatprep.mubr.msk.f32.mxu0 %vm143_vm0, %v38_v18 }
  0x16   :  { %105 = vperm.xlu0 %868, %v55_v21  }
  0x17   :  { %110 = vperm.xlu1 %869, %v56_v23  }
  0x18   :  { %801 = vmatmul.mubr.msk.f32.gmra.mrb[8].mxu0 %vm143_vm0, %v39_v20 }
  0x19   :  { %803 = vmatprep.mubr.msk.f32.mxu0 %vm143_vm0, %v40_v22 }
  0x1a   :  { %14 = vsyncpa [#allocation4], 0  ;;  %v42_v26 = vld [vmem:[%s1167_s1 + $0x60] sm:$0xff]  ;;  %v58_v27 = vld [vmem:[%s1168_s2 + $0x58] sm:$0xff]  ;;  %115 = vperm.xlu0 %868, %v57_v24   ;;  %vm908_vm1 = vmmov 0   ;;  %s909_s11 = smov [#allocation3]  }
  0x1b   :  { %v59_v28 = vld [vmem:[%s1168_s2 + $0x60] sm:$0xff]  ;;  %v43_v29 = vld [vmem:[%s1167_s1 + $0x68] sm:$0xff]  ;;  %120 = vperm.xlu1 %869, %v58_v27   ;;  %v44_v30 = vld [vmem:[%s1167_s1 + $0x70] sm:$0xff]  ;;  %s710_s12 = sshll.u32 %s909_s11, 4  ;;  %vm702_vm2 = vcmask 57344   ;;  %s711_s12 = int_to_ptr.vmem [resolvable:$true] %s710_s12 }
  0x1c   :  { %804 = vmatmul.mubr.msk.f32.gmra.mrb[10].mxu0 %vm143_vm0, %v41_v25  ;;  %v60_v31 = vld [vmem:[%s1168_s2 + $0x68] sm:$0xff]  ;;  %v61_v32 = vld [vmem:[%s1168_s2 + $0x70] sm:$0xff]  ;;  %v45_v33 = vld [vmem:[%s1167_s1 + $0x78] sm:$0xff]  ;;  %s886_s13 = scalar_lea.vmem %s711_s12, 32  ;;  %p887_p1 = scmp.lt.s32.totalorder %s711_s12, %s711_s12 }
  0x1d   :  { %806 = vmatprep.mubr.msk.f32.mxu0 %vm143_vm0, %v42_v26  ;;  %v62_v34 = vld [vmem:[%s1168_s2 + $0x78] sm:$0xff]  ;;  %v380_v35 = vld [vmem:[%s1170_s4] sm:$0xff]  ;;  %v381_v36 = vld [vmem:[%s1170_s4 + $0x8] sm:$0xff] }
  0x1e   :  { %125 = vperm.xlu0 %868, %v59_v28   ;;  %v382_v37 = vld [vmem:[%s1170_s4 + $0x10] sm:$0xff]  ;;  %v383_v38 = vld [vmem:[%s1170_s4 + $0x18] sm:$0xff]  ;;  %v384_v39 = vld [vmem:[%s1170_s4 + $0x20] sm:$0xff] }
  0x1f   :  { %130 = vperm.xlu1 %869, %v60_v31   ;;  %v385_v40 = vld [vmem:[%s1170_s4 + $0x28] sm:$0xff]  ;;  %v386_v41 = vld [vmem:[%s1170_s4 + $0x30] sm:$0xff]  ;;  %v387_v42 = vld [vmem:[%s1170_s4 + $0x38] sm:$0xff] }
  0x20   :  { %807 = vmatmul.mubr.msk.f32.gmra.mrb[12].mxu0 %vm143_vm0, %v43_v29  ;;  %v388_v43 = vld [vmem:[%s1170_s4 + $0x40] sm:$0xff]  ;;  %v389_v44 = vld [vmem:[%s1170_s4 + $0x48] sm:$0xff]  ;;  %v390_v45 = vld [vmem:[%s1170_s4 + $0x50] sm:$0xff] }
  0x21   :  { %809 = vmatprep.mubr.msk.f32.mxu0 %vm143_vm0, %v44_v30  ;;  %v391_v46 = vld [vmem:[%s1170_s4 + $0x58] sm:$0xff]  ;;  %v392_v47 = vld [vmem:[%s1170_s4 + $0x60] sm:$0xff]  ;;  %v393_v48 = vld [vmem:[%s1170_s4 + $0x68] sm:$0xff] }
  0x22   :  { %135 = vperm.xlu0 %868, %v61_v32   ;;  %v394_v49 = vld [vmem:[%s1170_s4 + $0x70] sm:$0xff]  ;;  %v395_v50 = vld [vmem:[%s1170_s4 + $0x78] sm:$0xff]  ;;  %v646_v51 = vld [vmem:[#allocation2] sm:$0x1] }
  0x23   :  { %140 = vperm.xlu1 %869, %v62_v34   ;;  %v870_v52 = vld [vmem:[%s1169_s3] sm:$0xff]  }
  0x24   :  { %810 = vmatmul.mubr.msk.f32.gmra.mrb[14].mxu0 %vm143_vm0, %v45_v33  ;;  %828 = vmatprep.mubr.bf16.mxu1 %v870_v52 }
  0x26   :  { %398 = vperm.xlu0 %868, %v380_v35  }
  0x27   :  { %403 = vperm.xlu1 %869, %v381_v36  }
  0x2a   :  { %408 = vperm.xlu0 %868, %v382_v37  }
  0x2b   :  { %413 = vperm.xlu1 %869, %v383_v38  }
  0x2e   :  { %418 = vperm.xlu0 %868, %v384_v39  }
  0x2f   :  { %423 = vperm.xlu1 %869, %v385_v40  }
  0x32   :  { %428 = vperm.xlu0 %868, %v386_v41  }
  0x33   :  { %433 = vperm.xlu1 %869, %v387_v42  }
  0x36   :  { %438 = vperm.xlu0 %868, %v388_v43  }
  0x37   :  { %443 = vperm.xlu1 %869, %v389_v44  }
  0x3a   :  { %448 = vperm.xlu0 %868, %v390_v45  }
  0x3b   :  { %453 = vperm.xlu1 %869, %v391_v46  }
  0x3e   :  { %458 = vperm.xlu0 %868, %v392_v47  }
  0x3f   :  { %463 = vperm.xlu1 %869, %v393_v48  }
  0x42   :  { %468 = vperm.xlu0 %868, %v394_v49  }
  0x43   :  { %473 = vperm.xlu1 %869, %v395_v50  }
  0x46   :  { %649 = vperm.xlu0 %868, %v646_v51  }
  0x85   :  { %v66_v54 = vpop.permute.xlu0 %65 }
  0x86   :  { %v76_v53 = vpop.permute.xlu1 %75 }
  0x89   :  { %v71_v56 = vpop.permute.xlu0 %70 }
  0x8a   :  { %v81_v55 = vpop.permute.xlu1 %80 }
  0x8d   :  { %v86_v58 = vpop.permute.xlu0 %85 }
  0x8e   :  { %v91_v57 = vpop.permute.xlu1 %90 }
  0x91   :  { %v96_v3 = vpop.permute.xlu0 %95 }
  0x92   :  { %v101_v0 = vpop.permute.xlu1 %100 }
  0x95   :  { %v106_v16 = vpop.permute.xlu0 %105 }
  0x96   :  { %v111_v13 = vpop.permute.xlu1 %110 }
  0x99   :  { %v116_v28 = vpop.permute.xlu0 %115 }
  0x9a   :  { %v121_v25 = vpop.permute.xlu1 %120 }
  0x9d   :  { %v126_v41 = vpop.permute.xlu0 %125 }
  0x9e   :  { %v131_v38 = vpop.permute.xlu1 %130 }
  0xa2   :  { %v141_v50 = vpop.permute.xlu1 %140 }
  0xdb   :  { %v790_v59 = vpop.f32.mrb[0].mxu0 }
  0xdc   :  { %v267_v60 = vadd.f32 %v790_v59, %v71_v56  ;;  %v261_v61 = vpop.f32.mrb[1].mxu0 }
  0xdd   :  { %v262_v62 = vadd.f32 %v261_v61, %v66_v54  ;;  %v871_v61 = vld [vmem:[%s1169_s3 + $0x8] sm:$0xff]  }
  0xde   :  { %v341_v63 = vmax.f32 %v267_v60, 0.0 }
  0xdf   :  { %v340_v1 = vmax.f32 %v262_v62, 0.0  ;;  %v793_v2 = vpop.f32.mrb[2].mxu0  ;;  %v872_v62 = vld [vmem:[%s1169_s3 + $0x10] sm:$0xff]  }
  0xe0   :  { %v277_v4 = vadd.f32 %v793_v2, %v81_v55  ;;  %v271_v5 = vpop.f32.mrb[3].mxu0  ;;  %v876_v2 = vld [vmem:[%s1169_s3 + $0x30] sm:$0xff]  }
  0xe1   :  { %v272_v6 = vadd.f32 %v271_v5, %v76_v53  ;;  %v372_v7 = vpack.c.bf16 %v341_v63, %v340_v1  ;;  %v136_v53 = vpop.permute.xlu0 %135  ;;  %v873_v63 = vld [vmem:[%s1169_s3 + $0x18] sm:$0xff]   ;;  %v875_v1 = vld [vmem:[%s1169_s3 + $0x28] sm:$0xff]  }
  0xe2   :  { %v343_v8 = vmax.f32 %v277_v4, 0.0  ;;  %v907_v4 = vmov 0.0  }
  0xe3   :  { %v342_v9 = vmax.f32 %v272_v6, 0.0  ;;  %v796_v10 = vpop.f32.mrb[4].mxu0  ;;  %812 = vmatprep.subr.bf16.mxu1 %v372_v7  ;;  %844 = vmatprep.subr.bf16.mxu0 %v907_v4  ;;  %v404_v6 = vpop.permute.xlu1 %403 }
  0xe4   :  { %v287_v11 = vadd.f32 %v796_v10, %v91_v57  ;;  %v281_v12 = vpop.f32.mrb[5].mxu0  ;;  %813 = vmatpush3.bf16.msra.mxu1 %v372_v7  ;;  %860 = vmatprep.mubr.msk.bf16.mxu0 %vm908_vm1, %v907_v4 }
  0xe5   :  { %v373_v14 = vpack.c.bf16 %v343_v8, %v342_v9  ;;  %v282_v15 = vadd.f32 %v281_v12, %v86_v58  ;;  %v399_v5 = vpop.permute.xlu0 %398 }
  0xe6   :  { %v345_v17 = vmax.f32 %v287_v11, 0.0 }
  0xe7   :  { %v344_v18 = vmax.f32 %v282_v15, 0.0  ;;  %v799_v19 = vpop.f32.mrb[6].mxu0  ;;  %814 = vmatprep.subr.bf16.mxu1 %v373_v14  ;;  %v414_v8 = vpop.permute.xlu1 %413 }
  0xe8   :  { %v297_v20 = vadd.f32 %v799_v19, %v101_v0  ;;  %v291_v21 = vpop.f32.mrb[7].mxu0  ;;  %815 = vmatpush3.bf16.msra.mxu1 %v373_v14  ;;  %v874_v0 = vld [vmem:[%s1169_s3 + $0x20] sm:$0xff]  }
  0xe9   :  { %v374_v22 = vpack.c.bf16 %v345_v17, %v344_v18  ;;  %v292_v23 = vadd.f32 %v291_v21, %v96_v3  ;;  %v877_v3 = vld [vmem:[%s1169_s3 + $0x38] sm:$0xff]   ;;  %v409_v7 = vpop.permute.xlu0 %408 }
  0xea   :  { %v347_v24 = vmax.f32 %v297_v20, 0.0 }
  0xeb   :  { %v346_v26 = vmax.f32 %v292_v23, 0.0  ;;  %v802_v27 = vpop.f32.mrb[8].mxu0  ;;  %816 = vmatprep.subr.bf16.mxu1 %v374_v22  ;;  %v424_v10 = vpop.permute.xlu1 %423 }
  0xec   :  { %v307_v29 = vadd.f32 %v802_v27, %v111_v13  ;;  %v301_v30 = vpop.f32.mrb[9].mxu0  ;;  %817 = vmatpush3.bf16.msra.mxu1 %v374_v22 }
  0xed   :  { %v375_v31 = vpack.c.bf16 %v347_v24, %v346_v26  ;;  %v302_v32 = vadd.f32 %v301_v30, %v106_v16  ;;  %v419_v9 = vpop.permute.xlu0 %418 }
  0xee   :  { %v349_v33 = vmax.f32 %v307_v29, 0.0 }
  0xef   :  { %v348_v34 = vmax.f32 %v302_v32, 0.0  ;;  %v805_v35 = vpop.f32.mrb[10].mxu0  ;;  %818 = vmatprep.subr.bf16.mxu1 %v375_v31  ;;  %v434_v15 = vpop.permute.xlu1 %433 }
  0xf0   :  { %v317_v36 = vadd.f32 %v805_v35, %v121_v25  ;;  %v311_v37 = vpop.f32.mrb[11].mxu0  ;;  %819 = vmatpush3.bf16.msra.mxu1 %v375_v31 }
  0xf1   :  { %v376_v39 = vpack.c.bf16 %v349_v33, %v348_v34  ;;  %v312_v40 = vadd.f32 %v311_v37, %v116_v28  ;;  %v429_v11 = vpop.permute.xlu0 %428 }
  0xf2   :  { %v351_v42 = vmax.f32 %v317_v36, 0.0 }
  0xf3   :  { %v350_v43 = vmax.f32 %v312_v40, 0.0  ;;  %v808_v44 = vpop.f32.mrb[12].mxu0  ;;  %820 = vmatprep.subr.bf16.mxu1 %v376_v39  ;;  %v444_v27 = vpop.permute.xlu1 %443 }
  0xf4   :  { %v327_v45 = vadd.f32 %v808_v44, %v131_v38  ;;  %v321_v46 = vpop.f32.mrb[13].mxu0  ;;  %821 = vmatpush3.bf16.msra.mxu1 %v376_v39 }
  0xf5   :  { %v377_v47 = vpack.c.bf16 %v351_v42, %v350_v43  ;;  %v322_v48 = vadd.f32 %v321_v46, %v126_v41  ;;  %v439_v23 = vpop.permute.xlu0 %438 }
  0xf6   :  { %v353_v49 = vmax.f32 %v327_v45, 0.0 }
  0xf7   :  { %v352_v51 = vmax.f32 %v322_v48, 0.0  ;;  %v811_v52 = vpop.f32.mrb[14].mxu0  ;;  %822 = vmatprep.subr.bf16.mxu1 %v377_v47  ;;  %v454_v40 = vpop.permute.xlu1 %453 }
  0xf8   :  { %v337_v54 = vadd.f32 %v811_v52, %v141_v50  ;;  %v331_v55 = vpop.f32.mrb[15].mxu0  ;;  %823 = vmatpush3.bf16.msra.mxu1 %v377_v47 }
  0xf9   :  { %v378_v56 = vpack.c.bf16 %v353_v49, %v352_v51  ;;  %v332_v57 = vadd.f32 %v331_v55, %v136_v53  ;;  %v449_v36 = vpop.permute.xlu0 %448 }
  0xfa   :  { %v355_v58 = vmax.f32 %v337_v54, 0.0 }
  0xfb   :  { %v354_v59 = vmax.f32 %v332_v57, 0.0  ;;  %824 = vmatprep.subr.bf16.mxu1 %v378_v56  ;;  %v464_v53 = vpop.permute.xlu1 %463 }
  0xfc   :  { %825 = vmatpush3.bf16.msra.mxu1 %v378_v56 }
  0xfd   :  { %v379_v60 = vpack.c.bf16 %v355_v58, %v354_v59  ;;  %v459_v48 = vpop.permute.xlu0 %458 }
  0xff   :  { %826 = vmatprep.subr.bf16.mxu1 %v379_v60 }
 0x100   :  { %827 = vmatpush3.bf16.msra.mxu1 %v379_v60 }
 0x101   :  { %v469_v60 = vpop.permute.xlu0 %468 }
 0x103   :  { %829 = vmatmul.mubr.bf16.vlgmr.msra.gmra.mrb[0].mxu1 %v871_v61 }
 0x104   :  { %832 = vmatprep.mubr.bf16.mxu1 %v872_v62 }
 0x10b   :  { %833 = vmatmul.mubr.bf16.gmra.mrb[4].mxu1 %v873_v63 }
 0x10c   :  { %836 = vmatprep.mubr.bf16.mxu1 %v874_v0 }
 0x113   :  { %837 = vmatmul.mubr.bf16.gmra.mrb[8].mxu1 %v875_v1  ;;  %v474_v1 = vpop.permute.xlu1 %473 }
 0x114   :  { %840 = vmatprep.mubr.bf16.mxu1 %v876_v2 }
 0x11b   :  { %841 = vmatmul.mubr.bf16.gmra.mrb[12].mxu1 %v877_v3 }
 0x1d6   :  { %v830_v12 = vpop.f32.mrb[0].mxu1 }
 0x1d7   :  { %v567_v13 = vadd.f32 %v830_v12, %v409_v7  ;;  %v558_v14 = vpop.f32.mrb[1].mxu1 }
 0x1d8   :  { %v559_v16 = vadd.f32 %v558_v14, %v399_v5  ;;  %v831_v17 = vpop.f32.mrb[2].mxu1  ;;  %v637_v14 = vld [vmem:[%s1171_s5] sm:$0x1]  ;;  %s882_s5 = scalar_lea.vmem %s711_s12, 16 }
 0x1d9   :  { %v570_v18 = vadd.f32 %v831_v17, %v414_v8  ;;  %v561_v19 = vpop.f32.mrb[3].mxu1  ;;  %v623_v21 = vmax.f32 %v567_v13, 0.0  ;;  %p883_p0 = scmp.ne.s32.totalorder %s711_s12, %s882_s5  ;;  %p888_p2 = scmp.lt.s32.totalorder %s886_s13, %s882_s5 }
 0x1da   :  { %v562_v20 = vadd.f32 %v561_v19, %v404_v6  ;;  %v621_v24 = vmax.f32 %v559_v16, 0.0 }
 0x1db   :  { %v624_v22 = vmax.f32 %v570_v18, 0.0  ;;  %v650_v18 = vpop.permute.xlu0 %649  ;;  %p889_p3 = por %p888_p2, %p887_p1 }
 0x1dc   :  { %v622_v25 = vmax.f32 %v562_v20, 0.0 }
 0x1dd   :  { %v639_v26 = vpack.c.bf16 %v624_v22, %v623_v21  ;;  %p890_p4 = pnand %p889_p3, %p883_p0 }
 0x1de   :  { %v638_v28 = vpack.c.bf16 %v622_v25, %v621_v24  ;;  %v834_v29 = vpop.f32.mrb[4].mxu1 }
 0x1df   :  { %v583_v30 = vadd.f32 %v834_v29, %v429_v11  ;;  %v574_v31 = vpop.f32.mrb[5].mxu1 }
 0x1e0   :  { %v575_v32 = vadd.f32 %v574_v31, %v419_v9  ;;  %v835_v33 = vpop.f32.mrb[6].mxu1  ;;  %845 = vmatpush3.bf16.msra.mxu0 %v638_v28 }
 0x1e1   :  { %v586_v34 = vadd.f32 %v835_v33, %v434_v15  ;;  %v577_v35 = vpop.f32.mrb[7].mxu1  ;;  %846 = vmatprep.subr.bf16.mxu0 %v907_v4  ;;  %v627_v38 = vmax.f32 %v583_v30, 0.0  ;;  %v652_v15 = vlaneseq }
 0x1e2   :  { %v578_v37 = vadd.f32 %v577_v35, %v424_v10  ;;  %v625_v41 = vmax.f32 %v575_v32, 0.0 }
 0x1e3   :  { %v628_v39 = vmax.f32 %v586_v34, 0.0  ;;  %v653_v16 = vshrl.u32 %v652_v15, 7 }
 0x1e4   :  { %v626_v42 = vmax.f32 %v578_v37, 0.0  ;;  %847 = vmatpush3.bf16.msra.mxu0 %v639_v26 }
 0x1e5   :  { %v641_v43 = vpack.c.bf16 %v628_v39, %v627_v38  ;;  %848 = vmatprep.subr.bf16.mxu0 %v907_v4  ;;  %v654_v17 = vsub.s32 0, %v653_v16 }
 0x1e6   :  { %v640_v44 = vpack.c.bf16 %v626_v42, %v625_v41  ;;  %v838_v45 = vpop.f32.mrb[8].mxu1 }
 0x1e7   :  { %v599_v46 = vadd.f32 %v838_v45, %v449_v36  ;;  %v590_v47 = vpop.f32.mrb[9].mxu1  ;;  %v655_v19 = vrot.slane %v650_v18, %v654_v17 }
 0x1e8   :  { %v591_v49 = vadd.f32 %v590_v47, %v439_v23  ;;  %v839_v50 = vpop.f32.mrb[10].mxu1  ;;  %849 = vmatpush3.bf16.msra.mxu0 %v640_v44 }
 0x1e9   :  { %v602_v51 = vadd.f32 %v839_v50, %v454_v40  ;;  %v593_v52 = vpop.f32.mrb[11].mxu1  ;;  %850 = vmatprep.subr.bf16.mxu0 %v907_v4  ;;  %v631_v55 = vmax.f32 %v599_v46, 0.0 }
 0x1ea   :  { %v594_v54 = vadd.f32 %v593_v52, %v444_v27  ;;  %v629_v57 = vmax.f32 %v591_v49, 0.0 }
 0x1eb   :  { %v632_v56 = vmax.f32 %v602_v51, 0.0 }
 0x1ec   :  { %v630_v58 = vmax.f32 %v594_v54, 0.0  ;;  %851 = vmatpush3.bf16.msra.mxu0 %v641_v43 }
 0x1ed   :  { %v643_v59 = vpack.c.bf16 %v632_v56, %v631_v55  ;;  %852 = vmatprep.subr.bf16.mxu0 %v907_v4 }
 0x1ee   :  { %v642_v61 = vpack.c.bf16 %v630_v58, %v629_v57  ;;  %v842_v62 = vpop.f32.mrb[12].mxu1 }
 0x1ef   :  { %v615_v63 = vadd.f32 %v842_v62, %v469_v60  ;;  %v606_v0 = vpop.f32.mrb[13].mxu1 }
 0x1f0   :  { %v607_v2 = vadd.f32 %v606_v0, %v459_v48  ;;  %v843_v3 = vpop.f32.mrb[14].mxu1  ;;  %853 = vmatpush3.bf16.msra.mxu0 %v642_v61 }
 0x1f1   :  { %v618_v5 = vadd.f32 %v843_v3, %v474_v1  ;;  %v609_v6 = vpop.f32.mrb[15].mxu1  ;;  %854 = vmatprep.subr.bf16.mxu0 %v907_v4  ;;  %v635_v8 = vmax.f32 %v615_v63, 0.0 }
 0x1f2   :  { %v610_v7 = vadd.f32 %v609_v6, %v464_v53  ;;  %v633_v10 = vmax.f32 %v607_v2, 0.0 }
 0x1f3   :  { %v636_v9 = vmax.f32 %v618_v5, 0.0 }
 0x1f4   :  { %v634_v11 = vmax.f32 %v610_v7, 0.0  ;;  %855 = vmatpush3.bf16.msra.mxu0 %v643_v59 }
 0x1f5   :  { %v645_v12 = vpack.c.bf16 %v636_v9, %v635_v8  ;;  %856 = vmatprep.subr.bf16.mxu0 %v907_v4 }
 0x1f6   :  { %v644_v13 = vpack.c.bf16 %v634_v11, %v633_v10 }
 0x1f8   :  { %857 = vmatpush3.bf16.msra.mxu0 %v644_v13 }
 0x1f9   :  { %858 = vmatprep.subr.bf16.mxu0 %v907_v4 }
 0x1fc   :  { %859 = vmatpush3.bf16.msra.mxu0 %v645_v12 }
 0x1ff   :  { %861 = vmatmul.mubr.bf16.vlgmr.msra.gmra.mrb[16].mxu0 %v637_v14 }
 0x2d2   :  { %v690_v20 = vpop.f32.mrb[16].mxu0 }
 0x2d3   :  { %v691_v21 = vadd.f32 %v690_v20, %v655_v19  ;;  %v862_v22 = vpop.f32.mrb[17].mxu0 }
 0x2d4   :  { %v693_v23 = vpop.f32.mrb[18].mxu0 }
 0x2d5   :  { %v743_v24 = vmul.f32 -1.442695, %v691_v21  ;;  %v863_v25 = vpop.f32.mrb[19].mxu0 }
 0x2d7   :  { %878 = vpow2.f32 %v743_v24 }
 0x2e1   :  { %v879_v26 = vpop.eup %878 }
 0x2e2   :  { %v699_v4 = vadd.f32 1.0, %v879_v26 }
 0x2e4   :  { %880 = vrcp.f32 %v699_v4 }
 0x2ee   :  { %v881_v27 = vpop.eup %880 }
 0x2ef   :  { %703 = vst.msk [vmem:[#allocation3] sm:$0x1] %vm702_vm2, %v881_v27 }
 0x2f0   :  { %893 = shalt.err (!%p890_p4)
}
 0x2f1   :  { %s894_s16 = scalar_lea.hbm %s1173_s7, 16 }
 0x2f2   :  { %p895_p5 = scmp.ne.s32.totalorder %s1173_s7, %s894_s16  ;;  %p898_p6 = scmp.lt.u32.totalorder %s894_s16, %s1173_s7 }
 0x2f4   :  { %p900_p7 = pnand %p898_p6, %p895_p5 }
 0x2f6   :  { %903 = shalt.err (!%p900_p7)
}
 0x2f7   :  { %713 = dma.vmem_to_hbm [thread:$0]  %s711_s12, 16, %s1173_s7, [#allocation4]  }
 0x2f8   :  { %904 = dma.done.wait [#allocation4], 16  }
 0x2f9   :  { %905 = vsyncadd [#allocation4], 4294967280 }
 0x2fa   :  { %717 = vsyncpa [#allocation4], 1 }

</bundles_post_ra>
